<compile_context>
chip_gen: v7x
topology: tpu7x:2x2x1
jax: 0.10.0
libtpu: 0.0.40
codegen_flags: <defaults>
</compile_context>

<pallas_src>
import functools
import math

import jax
import jax.numpy as jnp
from jax import lax
from jax.experimental import pallas as pl
from jax.experimental.pallas import tpu as pltpu


# ----------------------------------------------------------------------------
# Fused kernel: one batch element per grid step.
#   x_ref  : (T, E)       activations for this batch element
#   w1_ref : (3E, E)      linear_1 weight, torch layout (out, in)
#   w2_ref : (E, E)       linear_2 weight, torch layout (out, in)
#   o_ref  : (T, E)       output
# ----------------------------------------------------------------------------
def _fused_attention_kernel(x_ref, w1_ref, w2_ref, o_ref, *, heads, scale):
    x = x_ref[...]                      # (T, E)
    w1 = w1_ref[...]                    # (3E, E)
    w2 = w2_ref[...]                    # (E, E)
    T, E = x.shape
    Eh = E // heads

    # linear_1: x @ w1^T via dot_general (contract on the E axis of both)
    # -> (T, 3E) with f32 accumulation on the MXU; no transpose materialized.
    qkv = lax.dot_general(
        x, w1, (((1,), (1,)), ((), ())), preferred_element_type=jnp.float32
    )  # (T, 3E) f32

    # Column layout of qkv matches rearrange 'b t (n h e) -> n b h t e':
    #   q = cols [0, E), k = cols [E, 2E), v = cols [2E, 3E);
    #   within each block, head h occupies cols [h*Eh, (h+1)*Eh).
    head_outs = []
    for h in range(heads):                        # static unrolled loop (small H)
        q = qkv[:, h * Eh:(h + 1) * Eh] * scale               # fold scale into q
        k = qkv[:, E + h * Eh:E + (h + 1) * Eh]
        v = qkv[:, 2 * E + h * Eh:2 * E + (h + 1) * Eh]

        # scores: contract on Eh (no k.T), (T, T) in f32.
        s = lax.dot_general(
            q, k, (((1,), (1,)), ((), ())), preferred_element_type=jnp.float32
        )
        m = jnp.max(s, axis=-1, keepdims=True)
        p = jnp.exp(s - m)
        l = jnp.sum(p, axis=-1, keepdims=True)
        p = p * pl.reciprocal(l, approx=True)     # divide on the EUP slot

        head_outs.append(
            jnp.dot(p, v, preferred_element_type=jnp.float32)  # (T, Eh)
        )

    # Lane-dense (T, E) attention output: heads concatenated on the last axis.
    attn = jnp.concatenate(head_outs, axis=-1)    # (T, E) f32

    # linear_2: attn @ w2^T, again via contracting dims ((1,),(1,)).
    out = lax.dot_general(
        attn.astype(x.dtype), w2, (((1,), (1,)), ((), ())),
        preferred_element_type=jnp.float32,
    )
    o_ref[...] = out.astype(o_ref.dtype)


# ----------------------------------------------------------------------------
# Wrapper: single pallas_call, no XLA-side reshapes/transposes of activations.
# ----------------------------------------------------------------------------
def attention_forward(x: jax.Array, w1: jax.Array, w2: jax.Array, heads: int):
    """x: (B, T, E); w1: (3E, E); w2: (E, E) (torch nn.Linear layout)."""
    B, T, E = x.shape
    assert E % heads == 0, (E, heads)
    assert w1.shape == (3 * E, E), w1.shape
    assert w2.shape == (E, E), w2.shape
    scale = 1.0 / math.sqrt(E // heads)

    kernel = functools.partial(_fused_attention_kernel, heads=heads, scale=scale)
    return pl.pallas_call(
        kernel,
        out_shape=jax.ShapeDtypeStruct((B, T, E), x.dtype),
        grid=(B,),
        in_specs=[
            pl.BlockSpec((None, T, E), lambda b: (b, 0, 0)),   # x[b]
            pl.BlockSpec((3 * E, E), lambda b: (0, 0)),        # w1 (stays resident)
            pl.BlockSpec((E, E), lambda b: (0, 0)),            # w2 (stays resident)
        ],
        out_specs=pl.BlockSpec((None, T, E), lambda b: (b, 0, 0)),
        compiler_params=pltpu.CompilerParams(
            dimension_semantics=("parallel",),                 # batch -> 2 TCs on v7x
        ),
    )(x, w1, w2)


# ----------------------------------------------------------------------------
# Pure-JAX reference (mirrors the torch module) for a cheap sanity check.
# ----------------------------------------------------------------------------
def _reference(x, w1, w2, heads):
    B, T, E = x.shape
    Eh = E // heads
    qkv = x @ w1.T                                            # (B, T, 3E)
    qkv = qkv.reshape(B, T, 3, heads, Eh).transpose(2, 0, 3, 1, 4)
    q, k, v = qkv[0], qkv[1], qkv[2]                          # (B, H, T, Eh)
    s = jnp.einsum("bhtd,bhsd->bhts", q, k) / math.sqrt(Eh)
    p = jax.nn.softmax(s, axis=-1)
    o = jnp.einsum("bhts,bhsd->bhtd", p, v)                   # (B, H, T, Eh)
    o = o.transpose(0, 2, 1, 3).reshape(B, T, E)
    return o @ w2.T


if __name__ == "__main__":
    # Small shapes consistent with the module: B=2, T=8, E=32, heads=4 (Eh=8)
    B, T, E, HEADS = 2, 8, 32, 4

    key = jax.random.PRNGKey(0)
    kx, kw1, kw2 = jax.random.split(key, 3)

    x = jax.random.normal(kx, (B, T, E), dtype=jnp.float32)
    # torch.nn.Linear weight shapes: (out_features, in_features)
    w1 = jax.random.normal(kw1, (3 * E, E), dtype=jnp.float32) * 0.05
    w2 = jax.random.normal(kw2, (E, E), dtype=jnp.float32) * 0.05

    out = attention_forward(x, w1, w2, HEADS)
    jax.block_until_ready(out)
    assert out.shape == (B, T, E), out.shape

    ref = _reference(x, w1, w2, HEADS)
    err = float(jnp.max(jnp.abs(out - ref)))
    # Loose tolerance: approx reciprocal on the EUP introduces ~1e-4 rel error.
    assert err < 2e-2, f"max abs error {err}"

    print("KERNEL_OK")
</pallas_src>

<mosaic_0001>
module attributes {stable_mosaic.version = 11 : i64} {
  func.func @_fused_attention_kernel(%arg0: i32, %arg1: memref<1x8x32xf32, #tpu.memory_space<vmem>>, %arg2: memref<96x32xf32, #tpu.memory_space<vmem>>, %arg3: memref<32x32xf32, #tpu.memory_space<vmem>>, %arg4: memref<1x8x32xf32, #tpu.memory_space<vmem>>) attributes {dimension_semantics = [#tpu.dimension_semantics<parallel>], iteration_bounds = array<i64: 2>, scalar_prefetch = 0 : i64, scratch_operands = 0 : i64, tpu.core_type = #tpu.core_type<tc>, window_params = [{transform_indices = @transform_0, window_bounds = array<i64: 1, 8, 32>}, {pipeline_mode = #tpu.pipeline_mode<synchronous>, transform_indices = @transform_1, window_bounds = array<i64: 96, 32>}, {pipeline_mode = #tpu.pipeline_mode<synchronous>, transform_indices = @transform_2, window_bounds = array<i64: 32, 32>}, {transform_indices = @transform_3, window_bounds = array<i64: 1, 8, 32>}]} {
    %c0 = arith.constant 0 : index
    %c0_0 = arith.constant 0 : index
    %c0_1 = arith.constant 0 : index
    %0 = vector.load %arg1[%c0, %c0_0, %c0_1] : memref<1x8x32xf32, #tpu.memory_space<vmem>>, vector<1x8x32xf32>
    %1 = vector.shape_cast %0 : vector<1x8x32xf32> to vector<8x32xf32>
    %c0_2 = arith.constant 0 : index
    %c0_3 = arith.constant 0 : index
    %2 = vector.load %arg2[%c0_2, %c0_3] : memref<96x32xf32, #tpu.memory_space<vmem>>, vector<96x32xf32>
    %c0_4 = arith.constant 0 : index
    %c0_5 = arith.constant 0 : index
    %3 = vector.load %arg3[%c0_4, %c0_5] : memref<32x32xf32, #tpu.memory_space<vmem>>, vector<32x32xf32>
    %cst = arith.constant dense<0.000000e+00> : vector<8x96xf32>
    %4 = tpu.matmul %1, %2, %cst {dimension_numbers = #tpu.dot_dimension_numbers<[1], [1], [0], [0], [0, 0, 1, 0], [], []>} : vector<8x32xf32>, vector<96x32xf32>, vector<8x96xf32> -> vector<8x96xf32>
    %5 = vector.extract_strided_slice %4 {offsets = [0, 0], sizes = [8, 8], strides = [1, 1]} : vector<8x96xf32> to vector<8x8xf32>
    %cst_6 = arith.constant 0.353553385 : f32
    %6 = vector.broadcast %cst_6 : f32 to vector<8x8xf32>
    %7 = arith.mulf %5, %6 : vector<8x8xf32>
    %8 = vector.extract_strided_slice %4 {offsets = [0, 32], sizes = [8, 8], strides = [1, 1]} : vector<8x96xf32> to vector<8x8xf32>
    %9 = vector.extract_strided_slice %4 {offsets = [0, 64], sizes = [8, 8], strides = [1, 1]} : vector<8x96xf32> to vector<8x8xf32>
    %cst_7 = arith.constant dense<0.000000e+00> : vector<8x8xf32>
    %10 = tpu.matmul %7, %8, %cst_7 {dimension_numbers = #tpu.dot_dimension_numbers<[1], [1], [0], [0], [0, 0, 1, 0], [], []>} : vector<8x8xf32>, vector<8x8xf32>, vector<8x8xf32> -> vector<8x8xf32>
    %cst_8 = arith.constant dense<0xFF800000> : vector<8xf32>
    %11 = vector.multi_reduction <maximumf>, %10, %cst_8 [1] : vector<8x8xf32> to vector<8xf32>
    %12 = vector.shape_cast %11 : vector<8xf32> to vector<8x1xf32>
    %13 = vector.broadcast %12 : vector<8x1xf32> to vector<8x8xf32>
    %14 = arith.subf %10, %13 : vector<8x8xf32>
    %15 = math.exp %14 : vector<8x8xf32>
    %cst_9 = arith.constant dense<0.000000e+00> : vector<8xf32>
    %16 = vector.multi_reduction <add>, %15, %cst_9 [1] : vector<8x8xf32> to vector<8xf32>
    %17 = vector.shape_cast %16 : vector<8xf32> to vector<8x1xf32>
    %18 = tpu.reciprocal %17 {approx = true} : vector<8x1xf32> -> vector<8x1xf32>
    %19 = vector.broadcast %18 : vector<8x1xf32> to vector<8x8xf32>
    %20 = arith.mulf %15, %19 : vector<8x8xf32>
    %cst_10 = arith.constant dense<0.000000e+00> : vector<8x8xf32>
    %21 = tpu.matmul %20, %9, %cst_10 {dimension_numbers = #tpu.dot_dimension_numbers<[1], [0], [0], [1], [0, 0, 1, 1], [], []>} : vector<8x8xf32>, vector<8x8xf32>, vector<8x8xf32> -> vector<8x8xf32>
    %22 = vector.extract_strided_slice %4 {offsets = [0, 8], sizes = [8, 8], strides = [1, 1]} : vector<8x96xf32> to vector<8x8xf32>
    %cst_11 = arith.constant 0.353553385 : f32
    %23 = vector.broadcast %cst_11 : f32 to vector<8x8xf32>
    %24 = arith.mulf %22, %23 : vector<8x8xf32>
    %25 = vector.extract_strided_slice %4 {offsets = [0, 40], sizes = [8, 8], strides = [1, 1]} : vector<8x96xf32> to vector<8x8xf32>
    %26 = vector.extract_strided_slice %4 {offsets = [0, 72], sizes = [8, 8], strides = [1, 1]} : vector<8x96xf32> to vector<8x8xf32>
    %cst_12 = arith.constant dense<0.000000e+00> : vector<8x8xf32>
    %27 = tpu.matmul %24, %25, %cst_12 {dimension_numbers = #tpu.dot_dimension_numbers<[1], [1], [0], [0], [0, 0, 1, 0], [], []>} : vector<8x8xf32>, vector<8x8xf32>, vector<8x8xf32> -> vector<8x8xf32>
    %cst_13 = arith.constant dense<0xFF800000> : vector<8xf32>
    %28 = vector.multi_reduction <maximumf>, %27, %cst_13 [1] : vector<8x8xf32> to vector<8xf32>
    %29 = vector.shape_cast %28 : vector<8xf32> to vector<8x1xf32>
    %30 = vector.broadcast %29 : vector<8x1xf32> to vector<8x8xf32>
    %31 = arith.subf %27, %30 : vector<8x8xf32>
    %32 = math.exp %31 : vector<8x8xf32>
    %cst_14 = arith.constant dense<0.000000e+00> : vector<8xf32>
    %33 = vector.multi_reduction <add>, %32, %cst_14 [1] : vector<8x8xf32> to vector<8xf32>
    %34 = vector.shape_cast %33 : vector<8xf32> to vector<8x1xf32>
    %35 = tpu.reciprocal %34 {approx = true} : vector<8x1xf32> -> vector<8x1xf32>
    %36 = vector.broadcast %35 : vector<8x1xf32> to vector<8x8xf32>
    %37 = arith.mulf %32, %36 : vector<8x8xf32>
    %cst_15 = arith.constant dense<0.000000e+00> : vector<8x8xf32>
    %38 = tpu.matmul %37, %26, %cst_15 {dimension_numbers = #tpu.dot_dimension_numbers<[1], [0], [0], [1], [0, 0, 1, 1], [], []>} : vector<8x8xf32>, vector<8x8xf32>, vector<8x8xf32> -> vector<8x8xf32>
    %39 = vector.extract_strided_slice %4 {offsets = [0, 16], sizes = [8, 8], strides = [1, 1]} : vector<8x96xf32> to vector<8x8xf32>
    %cst_16 = arith.constant 0.353553385 : f32
    %40 = vector.broadcast %cst_16 : f32 to vector<8x8xf32>
    %41 = arith.mulf %39, %40 : vector<8x8xf32>
    %42 = vector.extract_strided_slice %4 {offsets = [0, 48], sizes = [8, 8], strides = [1, 1]} : vector<8x96xf32> to vector<8x8xf32>
    %43 = vector.extract_strided_slice %4 {offsets = [0, 80], sizes = [8, 8], strides = [1, 1]} : vector<8x96xf32> to vector<8x8xf32>
    %cst_17 = arith.constant dense<0.000000e+00> : vector<8x8xf32>
    %44 = tpu.matmul %41, %42, %cst_17 {dimension_numbers = #tpu.dot_dimension_numbers<[1], [1], [0], [0], [0, 0, 1, 0], [], []>} : vector<8x8xf32>, vector<8x8xf32>, vector<8x8xf32> -> vector<8x8xf32>
    %cst_18 = arith.constant dense<0xFF800000> : vector<8xf32>
    %45 = vector.multi_reduction <maximumf>, %44, %cst_18 [1] : vector<8x8xf32> to vector<8xf32>
    %46 = vector.shape_cast %45 : vector<8xf32> to vector<8x1xf32>
    %47 = vector.broadcast %46 : vector<8x1xf32> to vector<8x8xf32>
    %48 = arith.subf %44, %47 : vector<8x8xf32>
    %49 = math.exp %48 : vector<8x8xf32>
    %cst_19 = arith.constant dense<0.000000e+00> : vector<8xf32>
    %50 = vector.multi_reduction <add>, %49, %cst_19 [1] : vector<8x8xf32> to vector<8xf32>
    %51 = vector.shape_cast %50 : vector<8xf32> to vector<8x1xf32>
    %52 = tpu.reciprocal %51 {approx = true} : vector<8x1xf32> -> vector<8x1xf32>
    %53 = vector.broadcast %52 : vector<8x1xf32> to vector<8x8xf32>
    %54 = arith.mulf %49, %53 : vector<8x8xf32>
    %cst_20 = arith.constant dense<0.000000e+00> : vector<8x8xf32>
    %55 = tpu.matmul %54, %43, %cst_20 {dimension_numbers = #tpu.dot_dimension_numbers<[1], [0], [0], [1], [0, 0, 1, 1], [], []>} : vector<8x8xf32>, vector<8x8xf32>, vector<8x8xf32> -> vector<8x8xf32>
    %56 = vector.extract_strided_slice %4 {offsets = [0, 24], sizes = [8, 8], strides = [1, 1]} : vector<8x96xf32> to vector<8x8xf32>
    %cst_21 = arith.constant 0.353553385 : f32
    %57 = vector.broadcast %cst_21 : f32 to vector<8x8xf32>
    %58 = arith.mulf %56, %57 : vector<8x8xf32>
    %59 = vector.extract_strided_slice %4 {offsets = [0, 56], sizes = [8, 8], strides = [1, 1]} : vector<8x96xf32> to vector<8x8xf32>
    %60 = vector.extract_strided_slice %4 {offsets = [0, 88], sizes = [8, 8], strides = [1, 1]} : vector<8x96xf32> to vector<8x8xf32>
    %cst_22 = arith.constant dense<0.000000e+00> : vector<8x8xf32>
    %61 = tpu.matmul %58, %59, %cst_22 {dimension_numbers = #tpu.dot_dimension_numbers<[1], [1], [0], [0], [0, 0, 1, 0], [], []>} : vector<8x8xf32>, vector<8x8xf32>, vector<8x8xf32> -> vector<8x8xf32>
    %cst_23 = arith.constant dense<0xFF800000> : vector<8xf32>
    %62 = vector.multi_reduction <maximumf>, %61, %cst_23 [1] : vector<8x8xf32> to vector<8xf32>
    %63 = vector.shape_cast %62 : vector<8xf32> to vector<8x1xf32>
    %64 = vector.broadcast %63 : vector<8x1xf32> to vector<8x8xf32>
    %65 = arith.subf %61, %64 : vector<8x8xf32>
    %66 = math.exp %65 : vector<8x8xf32>
    %cst_24 = arith.constant dense<0.000000e+00> : vector<8xf32>
    %67 = vector.multi_reduction <add>, %66, %cst_24 [1] : vector<8x8xf32> to vector<8xf32>
    %68 = vector.shape_cast %67 : vector<8xf32> to vector<8x1xf32>
    %69 = tpu.reciprocal %68 {approx = true} : vector<8x1xf32> -> vector<8x1xf32>
    %70 = vector.broadcast %69 : vector<8x1xf32> to vector<8x8xf32>
    %71 = arith.mulf %66, %70 : vector<8x8xf32>
    %cst_25 = arith.constant dense<0.000000e+00> : vector<8x8xf32>
    %72 = tpu.matmul %71, %60, %cst_25 {dimension_numbers = #tpu.dot_dimension_numbers<[1], [0], [0], [1], [0, 0, 1, 1], [], []>} : vector<8x8xf32>, vector<8x8xf32>, vector<8x8xf32> -> vector<8x8xf32>
    %73 = tpu.concatenate %21, %38, %55, %72 in 1 : vector<8x8xf32>, vector<8x8xf32>, vector<8x8xf32>, vector<8x8xf32> -> vector<8x32xf32>
    %cst_26 = arith.constant dense<0.000000e+00> : vector<8x32xf32>
    %74 = tpu.matmul %73, %3, %cst_26 {dimension_numbers = #tpu.dot_dimension_numbers<[1], [1], [0], [0], [0, 0, 1, 0], [], []>} : vector<8x32xf32>, vector<32x32xf32>, vector<8x32xf32> -> vector<8x32xf32>
    %c0_27 = arith.constant 0 : index
    %c0_28 = arith.constant 0 : index
    %c0_29 = arith.constant 0 : index
    %75 = vector.load %arg4[%c0_27, %c0_28, %c0_29] : memref<1x8x32xf32, #tpu.memory_space<vmem>>, vector<1x8x32xf32>
    %76 = vector.shape_cast %75 : vector<1x8x32xf32> to vector<8x32xf32>
    %77 = vector.shape_cast %74 : vector<8x32xf32> to vector<1x8x32xf32>
    tpu.vector_store %arg4[%c0_27, %c0_28, %c0_29], %77 {strides = array<i32>} : memref<1x8x32xf32, #tpu.memory_space<vmem>>, vector<1x8x32xf32>,
    return
  }
  func.func @transform_0(%arg0: i32) -> (i32, i32, i32) {
    %c0_i32 = arith.constant 0 : i32
    %c0_i32_0 = arith.constant 0 : i32
    %c0_i32_1 = arith.constant 0 : i32
    return %arg0, %c0_i32, %c0_i32_0 : i32, i32, i32
  }
  func.func @transform_1(%arg0: i32) -> (i32, i32) {
    %c0_i32 = arith.constant 0 : i32
    %c0_i32_0 = arith.constant 0 : i32
    %c0_i32_1 = arith.constant 0 : i32
    return %c0_i32, %c0_i32_0 : i32, i32
  }
  func.func @transform_2(%arg0: i32) -> (i32, i32) {
    %c0_i32 = arith.constant 0 : i32
    %c0_i32_0 = arith.constant 0 : i32
    %c0_i32_1 = arith.constant 0 : i32
    return %c0_i32, %c0_i32_0 : i32, i32
  }
  func.func @transform_3(%arg0: i32) -> (i32, i32, i32) {
    %c0_i32 = arith.constant 0 : i32
    %c0_i32_0 = arith.constant 0 : i32
    %c0_i32_1 = arith.constant 0 : i32
    return %arg0, %c0_i32, %c0_i32_0 : i32, i32, i32
  }
}

</mosaic_0001>

<bundles_post_ra>
// kernel: tpu_custom_call.1
= control target key start
LH: loop header
LB: loop body
LE: loop exit
PB: predicated region body
PF: predicated region fallthrough
CT: control target
= control target key end

     0   :  { %8 = vsyncpa [#allocation3], 0  ;;  %s1739_s0 = inlined_call_operand.vmem [shape: f32[2,8,32], index: 0, kind: input, shape index: {}]   ;;  %s1740_s1 = inlined_call_operand.vmem [shape: f32[96,32], index: 1, kind: input, shape index: {}]   ;;  %s1741_s2 = inlined_call_operand.vmem [shape: f32[32,32], index: 2, kind: input, shape index: {}]   ;;  %s1742_s3 = inlined_call_operand.hbm [shape: f32[2,8,32], index: 3, kind: output, shape index: {}]  }
   0x1   :  { %10 = vsyncpa [#allocation3 + $0x1], 0  ;;  %s1489_s12 = smov 0   ;;  %s1491_s13 = smov 0  }
   0x2   :  { %s1493_s14 = smov 0   ;;  %s1495_s15 = smov 0  }
   0x3 LB: > { %s1510_s16 = sadd.s32 4294967295, %s1449_s15   ;;  %s1131_s17 = sadd.s32 4294967294, %s1449_s15   ;;  %s1449_s15 = sphi %s1495_s15, %s1750_s15   ;;  %s1445_s14 = sphi %s1493_s14, %s1749_s14   ;;  %s1441_s13 = sphi %s1491_s13, %s1748_s13   ;;  %s1437_s12 = sphi %s1489_s12, %s1747_s12  }
   0x4   : > { %s1514_s18 = sadd.s32 1, %s1449_s15   ;;  %s91_s19 = sadd.s32 1, %s1445_s14 }
   0x5   : > { %s88_s20 = ssub.s32 %s1449_s15, %s1514_s18  ;;  %p101_p0 = scmp.ne.s32.totalorder %s1445_s14, %s1441_s13 }
   0x6   : > { %p89_p1 = scmp.eq.s32.totalorder %s88_s20, 0  ;;  %p102_p2 = scmp.eq.s32.totalorder %s1510_s16, 1 }
   0x7   : > { %p107_p3 = scmp.ne.s32.totalorder %s1441_s13, %s1437_s12  ;;  %p108_p4 = scmp.eq.s32.totalorder %s1131_s17, 1 }
   0x8   : > { %s1525_s21 = scalar_select %p89_p1, %s1445_s14, %s91_s19  }
   0x9   : > { %p1527_p5 = por %p102_p2, %p101_p0  ;;  %p1531_p6 = por %p108_p4, %p107_p3 }
   0xa   : > { %p1134_p7 = scmp.ge.s32.totalorder %s1449_s15, 1  ;;  %p139_p8 = scmp.lt.s32.totalorder %s1449_s15, 3 }
   0xc   : > { %p140_p9 = pnand %p1134_p7, %p139_p8 }
   0xd   : > { %v167_v0 = vld [vmem:[%s1740_s1] sm:$0xff] (!%p140_p9)  ;;  %v168_v1 = vld [vmem:[%s1740_s1 + $0x8] sm:$0xff] (!%p140_p9)  ;;  %vm183_vm0 = vcmask (!%p140_p9), 261120   ;;  %v1451_v2 = vmov (!%p140_p9), 0.0|0.0   ;;  %vm1452_vm2 = vmmov (!%p140_p9), 0   ;;  %v1453_v5 = vmov (!%p140_p9), 0.0  }
   0xe   : > { %143 = sbr.rel (%p140_p9) target bundleno = 3063 (0xbf7), region = 32  ;;  %1283 = vmatprep.subr.bf16.mxu0 (!%p140_p9), %v1451_v2  ;;  %v1284_v3 = vpack.c.bf16 (!%p140_p9), %v168_v1, %v167_v0  ;;  %vm1546_vm1 = vmpackc.low (!%p140_p9), %vm183_vm0, %vm183_vm0  ;;  %1229 = vmatprep.mubr.msk.f32.mxu0 (!%p140_p9), %vm1452_vm2, %v1453_v5  ;;  %v169_v6 = vld [vmem:[%s1740_s1 + $0x10] sm:$0xff] (!%p140_p9)  ;;  %v170_v7 = vld [vmem:[%s1740_s1 + $0x18] sm:$0xff] (!%p140_p9)  ;;  %p162_p10 = scmp.lt.s32.totalorder (!%p140_p9), %s1510_s16, 1  ;;  %vm297_vm3 = vcmask (!%p140_p9), 64512   ;;  %vm968_vm4 = vcmask (!%p140_p9), 130048  }
   0xf   : > { %1232 = vmatprep.subr.mxu1 (!%p140_p9), %v1453_v5  ;;  %1234 = vmatprep.mubr.msk.f32.mxu1 (!%p140_p9), %vm1452_vm2, %v1453_v5  ;;  %v1288_v8 = vpack.c.bf16 (!%p140_p9), %v170_v7, %v169_v6  ;;  %v171_v9 = vld [vmem:[%s1740_s1 + $0x20] sm:$0xff] (!%p140_p9)  ;;  %v172_v10 = vld [vmem:[%s1740_s1 + $0x28] sm:$0xff] (!%p140_p9)  ;;  %v173_v12 = vld [vmem:[%s1740_s1 + $0x30] sm:$0xff] (!%p140_p9)  ;;  %s1454_s8 = smov (!%p140_p9), 64   ;;  %s1455_s9 = smov (!%p140_p9), 96   ;;  %vm970_vm5 = vcmask (!%p140_p9), 195584  }
  0x10   : > { %1286 = vmatpush3.bf16.xpose.msk.msra.mxu0 (!%p140_p9), %vm1546_vm1, %v1284_v3  ;;  %v1292_v11 = vpack.c.bf16 (!%p140_p9), %v172_v10, %v171_v9  ;;  %v174_v13 = vld [vmem:[%s1740_s1 + $0x38] sm:$0xff] (!%p140_p9)  ;;  %v175_v15 = vld [vmem:[%s1740_s1 + $0x40] sm:$0xff] (!%p140_p9)  ;;  %v176_v16 = vld [vmem:[%s1740_s1 + $0x48] sm:$0xff] (!%p140_p9)  ;;  %s1456_s10 = smov (!%p140_p9), 88   ;;  %s1457_s11 = smov (!%p140_p9), 56  }
  0x11   : > { %1287 = vmatprep.subr.bf16.mxu0 (!%p140_p9), %v1451_v2  ;;  %v1296_v14 = vpack.c.bf16 (!%p140_p9), %v174_v13, %v173_v12  ;;  %v1300_v17 = vpack.c.bf16 (!%p140_p9), %v176_v16, %v175_v15  ;;  %v177_v18 = vld [vmem:[%s1740_s1 + $0x50] sm:$0xff] (!%p140_p9)  ;;  %v178_v19 = vld [vmem:[%s1740_s1 + $0x58] sm:$0xff] (!%p140_p9)  ;;  %s1458_s17 = smov (!%p140_p9), 80   ;;  %s1459_s19 = smov (!%p140_p9), 120  }
  0x12   : > { %v1304_v20 = vpack.c.bf16 (!%p140_p9), %v178_v19, %v177_v18  ;;  %s1460_s20 = smov (!%p140_p9), 112   ;;  %s1461_s24 = smov (!%p140_p9), 48  }
  0x13   : > { %s1462_s25 = smov (!%p140_p9), 72   ;;  %s1463_s26 = smov (!%p140_p9), 104  }
  0x14   : > { %s1464_s27 = smov (!%p140_p9), 40   ;;  %s1465_s28 = smov (!%p140_p9), 8  }
  0x15   : > { %s163_s30 = scalar_select %p162_p10, %s1510_s16, 1 }
  0x16   : > { %s1466_s29 = smov 16  }
  0x17   : > { %s1136_s4 = sshll.u32 %s163_s30, 3 }
  0x18   : > { %1290 = vmatpush3.bf16.xpose.msk.msra.mxu0 %vm1546_vm1, %v1288_v8  ;;  %s165_s7 = scalar_lea.vmem %s1739_s0, %s1136_s4 }
  0x19   : > { %1291 = vmatprep.subr.bf16.mxu0 %v1451_v2  ;;  %v166_v21 = vld [vmem:[%s165_s7] sm:$0xff] }
  0x20   : > { %1294 = vmatpush3.bf16.xpose.msk.msra.mxu0 %vm1546_vm1, %v1292_v11 }
  0x21   : > { %1295 = vmatprep.subr.bf16.mxu0 %v1451_v2 }
  0x28   : > { %1298 = vmatpush3.bf16.xpose.msk.msra.mxu0 %vm1546_vm1, %v1296_v14 }
  0x29   : > { %1299 = vmatprep.subr.bf16.mxu0 %v1451_v2 }
  0x30   : > { %1302 = vmatpush3.bf16.xpose.msk.msra.mxu0 %vm1546_vm1, %v1300_v17 }
  0x31   : > { %1303 = vmatprep.subr.bf16.mxu0 %v1451_v2 }
  0x38   : > { %1306 = vmatpush3.bf16.xpose.msk.msra.mxu0 %vm1546_vm1, %v1304_v20 }
  0x3f   : > { %1230 = vmatmul.mubr.msk.f32.vlgmr.msra.gmra.mrb[0].mxu0 %vm183_vm0, %v166_v21 }
 0x112   : > { %v1608_v22 = vpop.f32.mrb[0].mxu0 }
 0x113   : > { %384 = vrot.lane.b32.xlu1 %v1608_v22, %s1454_s8  ;;  %295 = vrot.lane.b32.xlu0 %v1608_v22, %s1455_s9  ;;  %v1231_v23 = vpop.f32.mrb[1].mxu0  ;;  %v1615_v25 = vmul.f32 0.35355338, %v1608_v22 }
 0x117   : > { %462 = vrot.lane.b32.xlu1 %v1608_v22, %s1456_s10 }
 0x185   : > { %v296_v24 = vpop.permute.xlu0 %295  ;;  %v385_v26 = vpop.permute.xlu1 %384 }
 0x186   : > { %1233 = vmatpush3.xpose.msk.msra.mxu1 %vm297_vm3, %v296_v24 }
 0x187   : > { %1237 = vmatprep.subr.mxu1 %v1453_v5 }
 0x189   : > { %1235 = vmatmul.mubr.msk.f32.vlgmr.msra.gmra.mrb[0].mxu1 %vm297_vm3, %v1615_v25  ;;  %v463_v35 = vpop.permute.xlu1 %462 }
 0x18a   : > { %1238 = vmatpush3.msra.mxu1 %v385_v26  ;;  %1239 = vmatprep.mubr.msk.f32.mxu1 %vm1452_vm2, %v1453_v5  ;;  %v180_v26 = vld [vmem:[%s1741_s2 + $0x8] sm:$0xff] }
 0x18b   : > { %1242 = vmatprep.subr.mxu1 %v1453_v5 }
 0x25c   : > { %v369_v27 = vpop.f32.mrb[0].mxu1 }
 0x25d   : > { %v1236_v28 = vpop.f32.mrb[1].mxu1  ;;  %v373_v29 = vsel %vm297_vm3, %v369_v27, -inf }
 0x25e   : > { %374 = vmax.xlane.f32.xlu0 %v373_v29  ;;  %v181_v28 = vld [vmem:[%s1741_s2 + $0x10] sm:$0xff] }
 0x274   : > { %549 = vrot.lane.b32.xlu0 %v1608_v22, %s1457_s11  ;;  %s1467_s11 = smov 24  }
 0x278   : > { %627 = vrot.lane.b32.xlu0 %v1608_v22, %s1458_s17  ;;  %s159_s17 = sand.u32 1, %s1441_s13  }
 0x2eb   : > { %v375_v30 = vpop.xlane.xlu0 %374 }
 0x2ec   : > { %v376_v31 = vsub.f32 %v369_v27, %v375_v30 }
 0x2ee   : > { %v377_v32 = vmul.f32 1.442695, %v376_v31 }
 0x2ef   : > { %v550_v40 = vpop.permute.xlu0 %549 }
 0x2f0   : > { %1371 = vpow2.f32 %v377_v32 }
 0x2f3   : > { %v628_v51 = vpop.permute.xlu0 %627 }
 0x2fa   : > { %v1372_v33 = vpop.eup %1371 }
 0x2fb   : > { %v379_v34 = vsel %vm297_vm3, %v1372_v33, 0.0 }
 0x2fc   : > { %380 = vadd.xlane.f32.xlu1 %v379_v34 }
 0x30d   : > { %460 = vrot.lane.b32.xlu1 %v1615_v25, %s1459_s19  ;;  %s1135_s19 = sshll.u32 %s159_s17, 3 }
 0x389   : > { %v381_v36 = vpop.xlane.xlu1 %380 }
 0x38a   : > { %1373 = vrcp.f32 %v381_v36 }
 0x38d   : > { %v461_v39 = vpop.permute.xlu1 %460 }
 0x394   : > { %v1374_v37 = vpop.eup %1373 }
 0x395   : > { %v383_v38 = vmul.f32 %v1374_v37, %v1372_v33 }
 0x397   : > { %1240 = vmatmul.mubr.msk.f32.vlgmr.msra.gmra.mrb[2].mxu1 %vm297_vm3, %v383_v38 }
 0x398   : > { %1243 = vmatpush3.xpose.msk.msra.mxu1 %vm297_vm3, %v463_v35  ;;  %1244 = vmatprep.mubr.msk.f32.mxu1 %vm1452_vm2, %v1453_v5 }
 0x399   : > { %1247 = vmatprep.subr.mxu1 %v1453_v5 }
 0x39b   : > { %1245 = vmatmul.mubr.msk.f32.vlgmr.msra.gmra.mrb[4].mxu1 %vm297_vm3, %v461_v39 }
 0x39c   : > { %1248 = vmatpush3.msra.mxu1 %v550_v40  ;;  %1249 = vmatprep.mubr.msk.f32.mxu1 %vm1452_vm2, %v1453_v5 }
 0x39d   : > { %1252 = vmatprep.subr.mxu1 %v1453_v5 }
 0x46a   : > { %v1637_v41 = vpop.f32.mrb[2].mxu1 }
 0x46b   : > { %v1241_v42 = vpop.f32.mrb[3].mxu1 }
 0x46e   : > { %v534_v43 = vpop.f32.mrb[4].mxu1 }
 0x46f   : > { %v1246_v44 = vpop.f32.mrb[5].mxu1  ;;  %v538_v45 = vsel %vm297_vm3, %v534_v43, -inf }
 0x470   : > { %539 = vmax.xlane.f32.xlu1 %v538_v45 }
 0x4fd   : > { %v540_v46 = vpop.xlane.xlu1 %539 }
 0x4fe   : > { %v541_v47 = vsub.f32 %v534_v43, %v540_v46 }
 0x500   : > { %v542_v48 = vmul.f32 1.442695, %v541_v47 }
 0x502   : > { %1375 = vpow2.f32 %v542_v48 }
 0x50c   : > { %v1376_v49 = vpop.eup %1375 }
 0x50d   : > { %v544_v50 = vsel %vm297_vm3, %v1376_v49, 0.0 }
 0x50e   : > { %545 = vadd.xlane.f32.xlu0 %v544_v50 }
 0x524   : > { %625 = vrot.lane.b32.xlu0 %v1615_v25, %s1460_s20  ;;  %s1168_s20 = sshll.u32 %s1510_s16, 7  ;;  %s1468_s16 = smov [#allocation2]  }
 0x525   : > { %s1391_s4 = sshll.u32 %s1468_s16, 4  ;;  %s1392_s4 = int_to_ptr.vmem [resolvable:$false] %s1391_s4 }
 0x526   : > { %s1393_s5 = scalar_lea.vmem %s1392_s4, 256 }
 0x59b   : > { %v546_v52 = vpop.xlane.xlu0 %545 }
 0x59c   : > { %1377 = vrcp.f32 %v546_v52 }
 0x59f   : > { %v626_v55 = vpop.permute.xlu0 %625 }
 0x5a6   : > { %v1378_v53 = vpop.eup %1377 }
 0x5a7   : > { %v548_v54 = vmul.f32 %v1378_v53, %v1376_v49 }
 0x5a9   : > { %1250 = vmatmul.mubr.msk.f32.vlgmr.msra.gmra.mrb[6].mxu1 %vm297_vm3, %v548_v54 }
 0x5aa   : > { %1253 = vmatpush3.xpose.msk.msra.mxu1 %vm297_vm3, %v628_v51  ;;  %1254 = vmatprep.mubr.msk.f32.mxu1 %vm1452_vm2, %v1453_v5 }
 0x5ab   : > { %1257 = vmatprep.subr.mxu1 %v1453_v5 }
 0x5ad   : > { %1255 = vmatmul.mubr.msk.f32.vlgmr.msra.gmra.mrb[8].mxu1 %vm297_vm3, %v626_v55 }
 0x5ae   : > { %1259 = vmatprep.mubr.msk.f32.mxu1 %vm1452_vm2, %v1453_v5 }
 0x67c   : > { %v621_v56 = vpop.f32.mrb[6].mxu1 }
 0x67d   : > { %v1251_v57 = vpop.f32.mrb[7].mxu1 }
 0x680   : > { %v699_v58 = vpop.f32.mrb[8].mxu1 }
 0x681   : > { %v1256_v59 = vpop.f32.mrb[9].mxu1  ;;  %v703_v60 = vsel %vm297_vm3, %v699_v58, -inf }
 0x682   : > { %704 = vmax.xlane.f32.xlu1 %v703_v60 }
 0x693   : > { %714 = vrot.lane.b32.xlu1 %v1608_v22, %s1461_s24  ;;  %s161_s24 = scalar_lea.vmem [#allocation2], %s1135_s19 }
 0x697   : > { %792 = vrot.lane.b32.xlu1 %v1608_v22, %s1462_s25  ;;  %s1072_s25 = sshll.u32 %s161_s24, 4  ;;  %s1698_s25 = int_to_ptr.vmem [resolvable:$true] %s1072_s25 }
 0x698   : > { %s1387_s30 = scalar_lea.vmem %s1698_s25, 128  ;;  %p1394_p0 = scmp.lt.s32.totalorder %s1698_s25, %s1392_s4 }
 0x699   : > { %p1388_p11 = scmp.ne.s32.totalorder %s1698_s25, %s1387_s30  ;;  %p1395_p1 = scmp.lt.s32.totalorder %s1393_s5, %s1387_s30 }
 0x69b   : > { %790 = vrot.lane.b32.xlu1 %v1615_v25, %s1463_s26  ;;  %p1389_p12 = pnand %p1388_p11, %p1527_p5  ;;  %p1396_p2 = por %p1395_p1, %p1394_p0 }
 0x69d   : > { %p1390_p13 = pneg %p1389_p12 }
 0x69f   : > { %p1397_p3 = pnand %p1396_p2, %p1390_p13 }
 0x70f   : > { %v705_v61 = vpop.xlane.xlu1 %704 }
 0x710   : > { %v706_v62 = vsub.f32 %v699_v58, %v705_v61 }
 0x712   : > { %v707_v63 = vmul.f32 1.442695, %v706_v62 }
 0x713   : > { %v715_v0 = vpop.permute.xlu1 %714 }
 0x714   : > { %1379 = vpow2.f32 %v707_v63  ;;  %1258 = vmatpush3.msra.mxu1 %v715_v0 }
 0x715   : > { %1262 = vmatprep.subr.mxu1 %v1453_v5 }
 0x717   : > { %v793_v8 = vpop.permute.xlu1 %792 }
 0x71b   : > { %v791_v10 = vpop.permute.xlu1 %790 }
 0x71e   : > { %v1380_v1 = vpop.eup %1379 }
 0x71f   : > { %v709_v3 = vsel %vm297_vm3, %v1380_v1, 0.0 }
 0x720   : > { %710 = vadd.xlane.f32.xlu0 %v709_v3 }
 0x7ad   : > { %v711_v6 = vpop.xlane.xlu0 %710 }
 0x7ae   : > { %1381 = vrcp.f32 %v711_v6 }
 0x7b8   : > { %v1382_v7 = vpop.eup %1381 }
 0x7b9   : > { %v713_v9 = vmul.f32 %v1382_v7, %v1380_v1 }
 0x7bb   : > { %1260 = vmatmul.mubr.msk.f32.vlgmr.msra.gmra.mrb[10].mxu1 %vm297_vm3, %v713_v9 }
 0x7bc   : > { %1263 = vmatpush3.xpose.msk.msra.mxu1 %vm297_vm3, %v793_v8  ;;  %1264 = vmatprep.mubr.msk.f32.mxu1 %vm1452_vm2, %v1453_v5 }
 0x7bd   : > { %1267 = vmatprep.subr.mxu1 %v1453_v5 }
 0x7bf   : > { %1265 = vmatmul.mubr.msk.f32.vlgmr.msra.gmra.mrb[12].mxu1 %vm297_vm3, %v791_v10 }
 0x7c0   : > { %1269 = vmatprep.mubr.msk.f32.mxu1 %vm1452_vm2, %v1453_v5 }
 0x88e   : > { %v786_v11 = vpop.f32.mrb[10].mxu1 }
 0x88f   : > { %v1261_v12 = vpop.f32.mrb[11].mxu1 }
 0x892   : > { %v864_v13 = vpop.f32.mrb[12].mxu1 }
 0x893   : > { %v1266_v14 = vpop.f32.mrb[13].mxu1  ;;  %v868_v15 = vsel %vm297_vm3, %v864_v13, -inf }
 0x894   : > { %869 = vmax.xlane.f32.xlu1 %v868_v15 }
 0x921   : > { %v870_v16 = vpop.xlane.xlu1 %869 }
 0x922   : > { %v871_v17 = vsub.f32 %v864_v13, %v870_v16 }
 0x924   : > { %v872_v18 = vmul.f32 1.442695, %v871_v17 }
 0x926   : > { %1383 = vpow2.f32 %v872_v18 }
 0x930   : > { %v1384_v19 = vpop.eup %1383 }
 0x931   : > { %v874_v20 = vsel %vm297_vm3, %v1384_v19, 0.0 }
 0x932   : > { %875 = vadd.xlane.f32.xlu0 %v874_v20 }
 0x948   : > { %879 = vrot.lane.b32.xlu0 %v1608_v22, %s1464_s27  ;;  %v179_v22 = vld [vmem:[%s1741_s2] sm:$0xff] }
 0x949   : > { %v1308_v27 = vpack.c.bf16 %v180_v26, %v179_v22 }
 0x94c   : > { %956 = vrot.lane.b32.xlu0 %v621_v56, %s1465_s28  ;;  %s1696_s28 = scalar_lea.hbm %s1742_s3, %s1168_s20 }
 0x950   : > { %960 = vrot.lane.b32.xlu0 %v786_v11, %s1466_s29  ;;  %s1059_s29 = scalar_lea.sflag [#allocation3], %s159_s17 }
 0x9bf   : > { %v876_v21 = vpop.xlane.xlu0 %875 }
 0x9c0   : > { %1385 = vrcp.f32 %v876_v21 }
 0x9c3   : > { %v880_v23 = vpop.permute.xlu0 %879 }
 0x9c4   : > { %1268 = vmatpush3.msra.mxu1 %v880_v23 }
 0x9c5   : > { %1307 = vmatprep.subr.bf16.mxu1 %v1451_v2 }
 0x9c7   : > { %v957_v32 = vpop.permute.xlu0 %956 }
 0x9c8   : > { %v967_v33 = vsel %vm297_vm3, %v1637_v41, %v957_v32 }
 0x9ca   : > { %v1386_v24 = vpop.eup %1385 }
 0x9cb   : > { %v878_v25 = vmul.f32 %v1386_v24, %v1384_v19 }
 0x9cd   : > { %1270 = vmatmul.mubr.msk.f32.vlgmr.msra.gmra.mrb[14].mxu1 %vm297_vm3, %v878_v25 }
 0x9ce   : > { %1280 = vmatprep.mubr.msk.f32.mxu1 %vm1452_vm2, %v1453_v5  ;;  %1310 = vmatpush3.bf16.xpose.msk.msra.mxu1 %vm1546_vm1, %v1308_v27  ;;  %v182_v5 = vld [vmem:[%s1741_s2 + $0x18] sm:$0xff] }
 0x9cf   : > { %1311 = vmatprep.subr.bf16.mxu1 %v1451_v2  ;;  %v1312_v29 = vpack.c.bf16 %v182_v5, %v181_v28  ;;  %v961_v2 = vpop.permute.xlu0 %960 }
 0x9d0   : > { %v969_v34 = vsel %vm968_vm4, %v967_v33, %v961_v2 }
 0x9d6   : > { %1314 = vmatpush3.bf16.xpose.msk.msra.mxu1 %vm1546_vm1, %v1312_v29 }
 0xaa0   : > { %v951_v30 = vpop.f32.mrb[14].mxu1 }
 0xaa1   : > { %964 = vrot.lane.b32.xlu1 %v951_v30, %s1467_s11  ;;  %v1271_v31 = vpop.f32.mrb[15].mxu1 }
 0xb13   : > { %v965_v35 = vpop.permute.xlu1 %964 }
 0xb14   : > { %v971_v36 = vsel %vm970_vm5, %v969_v34, %v965_v35 }
 0xb15   : > { %1281 = vmatmul.mubr.msk.f32.vlgmr.msra.gmra.mrb[16].mxu1 %vm183_vm0, %v971_v36 }
 0xbe8   : > { %v1053_v4 = vpop.f32.mrb[16].mxu1 }
 0xbe9   : > { %1057 = vst.msk [vmem:[%s161_s24] sm:$0xff] %vm183_vm0, %v1053_v4  ;;  %v1282_v37 = vpop.f32.mrb[17].mxu1 }
 0xbea   : > { %1400 = shalt.err (!%p1397_p3)
}
 0xbeb   : > { %s1401_s6 = scalar_lea.hbm %s1696_s28, 128  ;;  %s1405_s9 = scalar_lea.hbm %s1742_s3, 256 }
 0xbec   : > { %p1402_p4 = scmp.ne.s32.totalorder %s1696_s28, %s1401_s6  ;;  %p1406_p9 = scmp.lt.u32.totalorder %s1696_s28, %s1742_s3 }
 0xbed   : > { %p1407_p10 = scmp.lt.u32.totalorder %s1405_s9, %s1401_s6  ;;  %p1409_p12 = scmp.lt.u32.totalorder %s1401_s6, %s1696_s28 }
 0xbee   : > { %p1403_p7 = pnand %p1402_p4, %p1527_p5 }
 0xbef   : > { %p1408_p11 = por %p1407_p10, %p1406_p9 }
 0xbf0   : > { %p1404_p8 = pneg %p1403_p7 }
 0xbf1   : > { %p1410_p13 = por %p1409_p12, %p1408_p11 }
 0xbf3   : > { %p1411_p0 = pnand %p1410_p13, %p1404_p8 }
 0xbf5   : > { %1414 = shalt.err (!%p1411_p0)
}
 0xbf6   : > { %1315 = dma.vmem_to_hbm [thread:$0]  (%p1527_p5), %s1698_s25, 128, %s1696_s28, %s1059_s29  }
 0xbf7 PF: > { %p1321_p1 = scmp.ge.s32.totalorder %s1449_s15, 2  ;;  %s1084_s17 = sand.u32 1, %s1437_s12  }
 0xbf8   : > { %s1085_s19 = scalar_lea.sflag [#allocation3], %s1084_s17 }
 0xbf9   : > { %p1318_p2 = pnand %p1321_p1, %p1531_p6 }
 0xbfb   : > { %1432 = dma.done.wait (!%p1318_p2), %s1085_s19, 128  }
 0xbfc   : > { %1434 = vsyncadd (!%p1318_p2), %s1085_s19, 4294967168  ;;  %p13_p3 = scmp.ge.s32.totalorder %s1514_s18, 4   ;;  %s1747_s12 = smov %s1441_s13 }
 0xbfd   : > { %s1748_s13 = smov %s1445_s14  ;;  %s1749_s14 = smov %s1525_s21 }
 0xbfe   : > { %s1750_s15 = smov %s1514_s18  ;;  %15 = sbr.rel (!%p13_p3) target bundleno = 3 (0x3), region = 67 }
 0xc05   :  { %1090 = vsyncpa [#allocation3], 1 }
 0xc06   :  { %1092 = vsyncpa [#allocation3 + $0x1], 1 }

</bundles_post_ra>
